<compile_context>
chip_gen: v7x
topology: tpu7x:2x2x1
jax: 0.10.0
libtpu: 0.0.40
codegen_flags: <defaults>
</compile_context>

<pallas_src>
import functools

import jax
import jax.numpy as jnp
from jax.experimental import pallas as pl
from jax.experimental.pallas import tpu as pltpu

_LANE = 128
_SUBLANE = 8


def _round_up(x, m):
    return (x + m - 1) // m * m


def _encoder_kernel(n_mlp_layers, num_labels, conditional, *refs):
    """Fused MLP(+ReLU) + fused (means|log_var) head over one batch tile.

    refs layout:
      x,
      [c]                         (only if conditional; (TILE_B,1) int32)
      w1_x, [w1_c], b1            (first layer; w1_c only if conditional)
      (w_i, b_i) * (n_mlp_layers-1)
      w_heads, b_heads            (fused means|log_var head, lane-padded)
      out                         ((TILE_B, out_pad) f32)
    """
    idx = 0
    x_ref = refs[idx]; idx += 1
    c_ref = None
    w1c_ref = None
    if conditional:
        c_ref = refs[idx]; idx += 1
        w1x_ref, w1c_ref, b1_ref = refs[idx:idx + 3]; idx += 3
    else:
        w1x_ref, b1_ref = refs[idx:idx + 2]; idx += 2

    rest = []
    for _ in range(n_mlp_layers - 1):
        rest.append((refs[idx], refs[idx + 1])); idx += 2

    wh_ref, bh_ref = refs[idx:idx + 2]; idx += 2
    out_ref = refs[idx]

    # First MLP layer with the one-hot concat fused in.
    h = jnp.dot(x_ref[...], w1x_ref[...], preferred_element_type=jnp.float32)
    if conditional:
        tile_b = x_ref.shape[0]
        iota = jax.lax.broadcasted_iota(jnp.int32, (tile_b, num_labels), 1)
        onehot = jnp.where(iota == c_ref[...], 1.0, 0.0).astype(w1c_ref.dtype)
        h += jnp.dot(onehot, w1c_ref[...], preferred_element_type=jnp.float32)
    h = jnp.maximum(h + b1_ref[...], 0.0)           # bias + ReLU in f32

    # Remaining hidden layers.
    for (w_ref, b_ref) in rest:
        h = jnp.dot(h.astype(w_ref.dtype), w_ref[...],
                    preferred_element_type=jnp.float32) + b_ref[...]
        h = jnp.maximum(h, 0.0)

    # Single fused head matmul; lane-dense (128-wide) output store.
    out = jnp.dot(h.astype(wh_ref.dtype), wh_ref[...],
                  preferred_element_type=jnp.float32) + bh_ref[...]
    out_ref[...] = out.astype(out_ref.dtype)


def encoder_forward(x, c, params, *, conditional, num_labels, latent_size,
                    compute_dtype=jnp.bfloat16,
                    vmem_budget_bytes=48 * 1024 * 1024):
    """JAX wrapper: param packing + batch-tiled fused Pallas kernel."""
    B, d_x = x.shape
    mlp = params["mlp"]                    # list of (W:(in,out), b:(1,out))
    n_mlp_layers = len(mlp)

    # ---- Fuse the two heads into one lane-padded weight/bias. ----
    wm, bm = params["means"]
    wv, bv = params["log_var"]
    out_valid = 2 * latent_size
    out_pad = _round_up(out_valid, _LANE)
    w_heads = jnp.pad(jnp.concatenate([wm, wv], axis=1),
                      ((0, 0), (0, out_pad - out_valid))).astype(compute_dtype)
    b_heads = jnp.pad(jnp.concatenate([bm, bv], axis=1),
                      ((0, 0), (0, out_pad - out_valid)))          # f32

    # ---- Split first-layer weight so the one-hot concat fuses in-kernel. ----
    w1, b1 = mlp[0]
    const_arrays = []
    if conditional:
        const_arrays += [w1[:d_x].astype(compute_dtype),
                         w1[d_x:d_x + num_labels].astype(compute_dtype),
                         b1]
    else:
        const_arrays += [w1.astype(compute_dtype), b1]
    for (w, b) in mlp[1:]:
        const_arrays += [w.astype(compute_dtype), b]
    const_arrays += [w_heads, b_heads]

    weight_bytes = int(sum(int(a.size) * a.dtype.itemsize for a in const_arrays))

    # ---- Pick the biggest batch tile that fits the VMEM budget. ----
    # Streaming bytes per row: double-buffered x (bf16) + labels (int32) + out (f32).
    stream_per_row = (2 * (d_x * jnp.dtype(compute_dtype).itemsize
                           + (4 if conditional else 0))
                      + 2 * out_pad * 4)
    cap = (vmem_budget_bytes - weight_bytes) // max(stream_per_row, 1)
    cap = max(_SUBLANE, (cap // _SUBLANE) * _SUBLANE)
    tile_b = int(min(1024, cap, _round_up(B, _SUBLANE)))
    B_pad = _round_up(B, tile_b)

    # ---- Build padded streaming inputs and specs. ----
    x_p = x.astype(compute_dtype)
    if B_pad != B:
        x_p = jnp.pad(x_p, ((0, B_pad - B), (0, 0)))
    flat_inputs = [x_p]
    in_specs = [pl.BlockSpec((tile_b, d_x), lambda i: (i, 0))]

    if conditional:
        c_p = c.astype(jnp.int32).reshape(B, 1)
        if B_pad != B:
            c_p = jnp.pad(c_p, ((0, B_pad - B), (0, 0)))
        flat_inputs.append(c_p)
        in_specs.append(pl.BlockSpec((tile_b, 1), lambda i: (i, 0)))

    for a in const_arrays:
        flat_inputs.append(a)
        # Constant block index -> stays resident in VMEM across grid steps.
        in_specs.append(pl.BlockSpec(a.shape, lambda i: (0, 0)))

    out_specs = pl.BlockSpec((tile_b, out_pad), lambda i: (i, 0))
    out_shape = jax.ShapeDtypeStruct((B_pad, out_pad), jnp.float32)
    grid = (B_pad // tile_b,)

    vmem_limit = int(min(64 * 1024 * 1024,
                         weight_bytes + tile_b * stream_per_row
                         + 16 * 1024 * 1024))

    kernel = functools.partial(_encoder_kernel, n_mlp_layers, num_labels,
                               conditional)

    fused = pl.pallas_call(
        kernel,
        out_shape=out_shape,
        grid=grid,
        in_specs=in_specs,
        out_specs=out_specs,
        compiler_params=pltpu.CompilerParams(
            dimension_semantics=("parallel",),   # megacore split on v7x
            vmem_limit_bytes=vmem_limit,
        ),
    )(*flat_inputs)

    means = fused[:B, :latent_size]
    log_vars = fused[:B, latent_size:out_valid]
    return means, log_vars


def init_encoder_params(key, layer_sizes, latent_size, conditional, num_labels):
    """Deterministic parameter init mimicking nn.Linear (stored as (in,out))."""
    layer_sizes = list(layer_sizes)
    if conditional:
        layer_sizes[0] += num_labels

    def linear_init(k, fan_in, fan_out):
        kw, kb = jax.random.split(k)
        bound = 1.0 / jnp.sqrt(fan_in)
        w = jax.random.uniform(kw, (fan_in, fan_out), jnp.float32, -bound, bound)
        b = jax.random.uniform(kb, (1, fan_out), jnp.float32, -bound, bound)
        return w, b

    keys = jax.random.split(key, len(layer_sizes) - 1 + 2)
    mlp = []
    for i, (in_size, out_size) in enumerate(zip(layer_sizes[:-1], layer_sizes[1:])):
        mlp.append(linear_init(keys[i], in_size, out_size))

    means = linear_init(keys[-2], layer_sizes[-1], latent_size)
    log_var = linear_init(keys[-1], layer_sizes[-1], latent_size)
    return {"mlp": mlp, "means": means, "log_var": log_var}


def encoder_reference(x, c, params, *, conditional, num_labels,
                      compute_dtype=jnp.bfloat16):
    """Pure-JAX reference mirroring the kernel's bf16/f32 mixed precision."""
    if conditional:
        onehot = jax.nn.one_hot(c, num_labels, dtype=x.dtype)
        x = jnp.concatenate([x, onehot], axis=-1)
    h = x.astype(compute_dtype)
    for (w, b) in params["mlp"]:
        h = jnp.dot(h, w.astype(compute_dtype),
                    preferred_element_type=jnp.float32) + b
        h = jnp.maximum(h, 0.0).astype(compute_dtype)
    wm, bm = params["means"]
    wv, bv = params["log_var"]
    means = jnp.dot(h, wm.astype(compute_dtype),
                    preferred_element_type=jnp.float32) + bm
    log_vars = jnp.dot(h, wv.astype(compute_dtype),
                       preferred_element_type=jnp.float32) + bv
    return means, log_vars


if __name__ == "__main__":
    # Small shapes consistent with the module: MLP [32 -> 64], latent 16,
    # conditional with 10 labels (effective first-layer input dim 32 + 10 = 42).
    batch = 2
    layer_sizes = [32, 64]
    latent_size = 16
    conditional = True
    num_labels = 10

    key = jax.random.PRNGKey(0)
    k_params, k_x, k_c = jax.random.split(key, 3)

    params = init_encoder_params(
        k_params, layer_sizes, latent_size, conditional, num_labels
    )

    x = jax.random.normal(k_x, (batch, layer_sizes[0]), dtype=jnp.float32)
    c = jax.random.randint(k_c, (batch,), 0, num_labels, dtype=jnp.int32)

    means, log_vars = encoder_forward(
        x, c, params,
        conditional=conditional, num_labels=num_labels, latent_size=latent_size,
    )
    jax.block_until_ready((means, log_vars))

    ref_means, ref_logv = encoder_reference(
        x, c, params, conditional=conditional, num_labels=num_labels
    )
    assert means.shape == (batch, latent_size)
    assert log_vars.shape == (batch, latent_size)
    assert jnp.allclose(means, ref_means, atol=1e-3, rtol=1e-3)
    assert jnp.allclose(log_vars, ref_logv, atol=1e-3, rtol=1e-3)

    print("KERNEL_OK")
</pallas_src>

<mosaic_0001>
module attributes {stable_mosaic.version = 11 : i64} {
  func.func @_encoder_kernel(%arg0: i32, %arg1: memref<8x32xbf16, #tpu.memory_space<vmem>>, %arg2: memref<8x1xi32, #tpu.memory_space<vmem>>, %arg3: memref<32x64xbf16, #tpu.memory_space<vmem>>, %arg4: memref<10x64xbf16, #tpu.memory_space<vmem>>, %arg5: memref<1x64xf32, #tpu.memory_space<vmem>>, %arg6: memref<64x128xbf16, #tpu.memory_space<vmem>>, %arg7: memref<1x128xf32, #tpu.memory_space<vmem>>, %arg8: memref<8x128xf32, #tpu.memory_space<vmem>>) attributes {dimension_semantics = [#tpu.dimension_semantics<parallel>], iteration_bounds = array<i64: 1>, scalar_prefetch = 0 : i64, scratch_operands = 0 : i64, tpu.core_type = #tpu.core_type<tc>, window_params = [{transform_indices = @transform_0, window_bounds = array<i64: 8, 32>}, {transform_indices = @transform_1, window_bounds = array<i64: 8, 1>}, {pipeline_mode = #tpu.pipeline_mode<synchronous>, transform_indices = @transform_2, window_bounds = array<i64: 32, 64>}, {pipeline_mode = #tpu.pipeline_mode<synchronous>, transform_indices = @transform_3, window_bounds = array<i64: 10, 64>}, {pipeline_mode = #tpu.pipeline_mode<synchronous>, transform_indices = @transform_4, window_bounds = array<i64: 1, 64>}, {pipeline_mode = #tpu.pipeline_mode<synchronous>, transform_indices = @transform_5, window_bounds = array<i64: 64, 128>}, {pipeline_mode = #tpu.pipeline_mode<synchronous>, transform_indices = @transform_6, window_bounds = array<i64: 1, 128>}, {transform_indices = @transform_7, window_bounds = array<i64: 8, 128>}]} {
    %c0 = arith.constant 0 : index
    %c0_0 = arith.constant 0 : index
    %0 = vector.load %arg1[%c0, %c0_0] : memref<8x32xbf16, #tpu.memory_space<vmem>>, vector<8x32xbf16>
    %c0_1 = arith.constant 0 : index
    %c0_2 = arith.constant 0 : index
    %1 = vector.load %arg3[%c0_1, %c0_2] : memref<32x64xbf16, #tpu.memory_space<vmem>>, vector<32x64xbf16>
    %cst = arith.constant dense<0.000000e+00> : vector<8x64xf32>
    %2 = tpu.matmul %0, %1, %cst {dimension_numbers = #tpu.dot_dimension_numbers<[1], [0], [0], [1], [0, 0, 1, 1], [], []>} : vector<8x32xbf16>, vector<32x64xbf16>, vector<8x64xf32> -> vector<8x64xf32>
    %3 = tpu.iota {dimensions = array<i32: 1>} : vector<8x10xi32>
    %c0_3 = arith.constant 0 : index
    %c0_4 = arith.constant 0 : index
    %4 = vector.load %arg2[%c0_3, %c0_4] : memref<8x1xi32, #tpu.memory_space<vmem>>, vector<8x1xi32>
    %5 = vector.broadcast %4 : vector<8x1xi32> to vector<8x10xi32>
    %6 = arith.cmpi eq, %3, %5 : vector<8x10xi32>
    %cst_5 = arith.constant 1.000000e+00 : f32
    %cst_6 = arith.constant 0.000000e+00 : f32
    %7 = vector.broadcast %cst_5 : f32 to vector<8x10xf32>
    %8 = vector.broadcast %cst_6 : f32 to vector<8x10xf32>
    %9 = arith.select %6, %7, %8 : vector<8x10xi1>, vector<8x10xf32>
    %10 = arith.truncf %9 : vector<8x10xf32> to vector<8x10xbf16>
    %c0_7 = arith.constant 0 : index
    %c0_8 = arith.constant 0 : index
    %11 = vector.load %arg4[%c0_7, %c0_8] : memref<10x64xbf16, #tpu.memory_space<vmem>>, vector<10x64xbf16>
    %cst_9 = arith.constant dense<0.000000e+00> : vector<8x64xf32>
    %12 = tpu.matmul %10, %11, %cst_9 {dimension_numbers = #tpu.dot_dimension_numbers<[1], [0], [0], [1], [0, 0, 1, 1], [], []>} : vector<8x10xbf16>, vector<10x64xbf16>, vector<8x64xf32> -> vector<8x64xf32>
    %13 = arith.addf %2, %12 : vector<8x64xf32>
    %c0_10 = arith.constant 0 : index
    %c0_11 = arith.constant 0 : index
    %14 = vector.load %arg5[%c0_10, %c0_11] : memref<1x64xf32, #tpu.memory_space<vmem>>, vector<1x64xf32>
    %15 = vector.broadcast %14 : vector<1x64xf32> to vector<8x64xf32>
    %16 = arith.addf %13, %15 : vector<8x64xf32>
    %cst_12 = arith.constant 0.000000e+00 : f32
    %17 = vector.broadcast %cst_12 : f32 to vector<8x64xf32>
    %18 = arith.maximumf %16, %17 : vector<8x64xf32>
    %19 = arith.truncf %18 : vector<8x64xf32> to vector<8x64xbf16>
    %c0_13 = arith.constant 0 : index
    %c0_14 = arith.constant 0 : index
    %20 = vector.load %arg6[%c0_13, %c0_14] : memref<64x128xbf16, #tpu.memory_space<vmem>>, vector<64x128xbf16>
    %cst_15 = arith.constant dense<0.000000e+00> : vector<8x128xf32>
    %21 = tpu.matmul %19, %20, %cst_15 {dimension_numbers = #tpu.dot_dimension_numbers<[1], [0], [0], [1], [0, 0, 1, 1], [], []>} : vector<8x64xbf16>, vector<64x128xbf16>, vector<8x128xf32> -> vector<8x128xf32>
    %c0_16 = arith.constant 0 : index
    %c0_17 = arith.constant 0 : index
    %22 = vector.load %arg7[%c0_16, %c0_17] : memref<1x128xf32, #tpu.memory_space<vmem>>, vector<1x128xf32>
    %23 = vector.broadcast %22 : vector<1x128xf32> to vector<8x128xf32>
    %24 = arith.addf %21, %23 : vector<8x128xf32>
    %c0_18 = arith.constant 0 : index
    %c0_19 = arith.constant 0 : index
    %25 = vector.load %arg8[%c0_18, %c0_19] : memref<8x128xf32, #tpu.memory_space<vmem>>, vector<8x128xf32>
    tpu.vector_store %arg8[%c0_18, %c0_19], %24 {strides = array<i32>} : memref<8x128xf32, #tpu.memory_space<vmem>>, vector<8x128xf32>,
    return
  }
  func.func @transform_0(%arg0: i32) -> (i32, i32) {
    %c0_i32 = arith.constant 0 : i32
    %c0_i32_0 = arith.constant 0 : i32
    return %arg0, %c0_i32 : i32, i32
  }
  func.func @transform_1(%arg0: i32) -> (i32, i32) {
    %c0_i32 = arith.constant 0 : i32
    %c0_i32_0 = arith.constant 0 : i32
    return %arg0, %c0_i32 : i32, i32
  }
  func.func @transform_2(%arg0: i32) -> (i32, i32) {
    %c0_i32 = arith.constant 0 : i32
    %c0_i32_0 = arith.constant 0 : i32
    %c0_i32_1 = arith.constant 0 : i32
    return %c0_i32, %c0_i32_0 : i32, i32
  }
  func.func @transform_3(%arg0: i32) -> (i32, i32) {
    %c0_i32 = arith.constant 0 : i32
    %c0_i32_0 = arith.constant 0 : i32
    %c0_i32_1 = arith.constant 0 : i32
    return %c0_i32, %c0_i32_0 : i32, i32
  }
  func.func @transform_4(%arg0: i32) -> (i32, i32) {
    %c0_i32 = arith.constant 0 : i32
    %c0_i32_0 = arith.constant 0 : i32
    %c0_i32_1 = arith.constant 0 : i32
    return %c0_i32, %c0_i32_0 : i32, i32
  }
  func.func @transform_5(%arg0: i32) -> (i32, i32) {
    %c0_i32 = arith.constant 0 : i32
    %c0_i32_0 = arith.constant 0 : i32
    %c0_i32_1 = arith.constant 0 : i32
    return %c0_i32, %c0_i32_0 : i32, i32
  }
  func.func @transform_6(%arg0: i32) -> (i32, i32) {
    %c0_i32 = arith.constant 0 : i32
    %c0_i32_0 = arith.constant 0 : i32
    %c0_i32_1 = arith.constant 0 : i32
    return %c0_i32, %c0_i32_0 : i32, i32
  }
  func.func @transform_7(%arg0: i32) -> (i32, i32) {
    %c0_i32 = arith.constant 0 : i32
    %c0_i32_0 = arith.constant 0 : i32
    return %arg0, %c0_i32 : i32, i32
  }
}

</mosaic_0001>

<bundles_post_ra>
// kernel: tpu_custom_call.1
= control target key start
LH: loop header
LB: loop body
LE: loop exit
PB: predicated region body
PF: predicated region fallthrough
CT: control target
= control target key end

     0   :  { %12 = vsyncpa [#allocation3], 0  ;;  %s579_s0 = inlined_call_operand.hbm [shape: bf16[8,32], index: 0, kind: input, shape index: {}]   ;;  %s580_s1 = inlined_call_operand.vmem [shape: s32[8,1], index: 1, kind: input, shape index: {}]   ;;  %s581_s2 = inlined_call_operand.vmem [shape: bf16[32,64], index: 2, kind: input, shape index: {}]   ;;  %s582_s3 = inlined_call_operand.hbm [shape: bf16[10,64], index: 3, kind: input, shape index: {}]   ;;  %s583_s4 = inlined_call_operand.vmem [shape: f32[1,64], index: 4, kind: input, shape index: {}]   ;;  %s584_s5 = inlined_call_operand.hbm [shape: bf16[64,128], index: 5, kind: input, shape index: {}]   ;;  %s585_s6 = inlined_call_operand.vmem [shape: f32[1,128], index: 6, kind: input, shape index: {}]   ;;  %s586_s7 = inlined_call_operand.hbm [shape: f32[8,128], index: 7, kind: output, shape index: {}]  }
   0x1   :  { %13 = vsyncpa [#allocation6], 0 }
   0x2   :  { %14 = vsyncpa [#allocation4], 0  ;;  %s461_s24 = smov [#allocation5]   ;;  %s367_s28 = scalar_lea.hbm %s582_s3, 128 }
   0x3   :  { %s34_s25 = sshll.u32 %s461_s24, 4  ;;  %p368_p0 = scmp.ne.s32.totalorder %s582_s3, %s367_s28  ;;  %s35_s25 = int_to_ptr.vmem [resolvable:$true] %s34_s25 }
   0x4   :  { %p371_p1 = scmp.lt.u32.totalorder %s367_s28, %s582_s3 }
   0x6   :  { %p373_p2 = pnand %p371_p1, %p368_p0 }
   0x8   :  { %376 = shalt.err (!%p373_p2)
}
   0x9   :  { %s377_s10 = scalar_lea.vmem %s35_s25, 128  ;;  %p382_p4 = scmp.lt.s32.totalorder %s35_s25, %s35_s25 }
   0xa   :  { %p378_p3 = scmp.ne.s32.totalorder %s35_s25, %s377_s10  ;;  %p383_p5 = scmp.lt.s32.totalorder %s377_s10, %s377_s10 }
   0xc   :  { %p384_p6 = por %p383_p5, %p382_p4 }
   0xe   :  { %p385_p7 = pnand %p384_p6, %p378_p3 }
  0x10   :  { %388 = shalt.err (!%p385_p7)
}
  0x11   :  { %s462_s11 = smov 64   ;;  %s463_s12 = smov 4  }
  0x12   :  { %40 = dma.hbm_to_vmem [thread:$0]  %s582_s3, 128, %s35_s25, [#allocation6], %s462_s11, %s462_s11, %s463_s12  }
  0x13   :  { %s464_s15 = smov [#allocation2]   ;;  %s465_s17 = smov [#allocation7]  }
  0x14   :  { %s21_s16 = sshll.u32 %s464_s15, 4  ;;  %s48_s18 = sshll.u32 %s465_s17, 4  ;;  %s22_s16 = int_to_ptr.vmem [resolvable:$true] %s21_s16  ;;  %s49_s18 = int_to_ptr.vmem [resolvable:$true] %s48_s18 }
  0x15   :  { %s389_s21 = scalar_lea.hbm %s579_s0, 64 }
  0x16   :  { %p390_p8 = scmp.ne.s32.totalorder %s579_s0, %s389_s21  ;;  %p393_p9 = scmp.lt.u32.totalorder %s389_s21, %s579_s0 }
  0x18   :  { %p395_p10 = pnand %p393_p9, %p390_p8 }
  0x1a   :  { %398 = shalt.err (!%p395_p10)
}
  0x1b   :  { %s399_s3 = scalar_lea.vmem %s22_s16, 64  ;;  %p404_p12 = scmp.lt.s32.totalorder %s22_s16, %s22_s16 }
  0x1c   :  { %p400_p11 = scmp.ne.s32.totalorder %s22_s16, %s399_s3  ;;  %p405_p13 = scmp.lt.s32.totalorder %s399_s3, %s399_s3 }
  0x1e   :  { %p406_p0 = por %p405_p13, %p404_p12 }
  0x20   :  { %p407_p1 = pnand %p406_p0, %p400_p11 }
  0x22   :  { %410 = shalt.err (!%p407_p1)
}
  0x23   :  { %24 = dma.hbm_to_vmem [thread:$0]  %s579_s0, 64, %s22_s16, [#allocation3]  }
  0x24   :  { %s411_s30 = scalar_lea.hbm %s584_s5, 512 }
  0x25   :  { %p412_p2 = scmp.ne.s32.totalorder %s584_s5, %s411_s30  ;;  %p415_p3 = scmp.lt.u32.totalorder %s411_s30, %s584_s5 }
  0x27   :  { %p417_p4 = pnand %p415_p3, %p412_p2 }
  0x29   :  { %420 = shalt.err (!%p417_p4)
}
  0x2a   :  { %s421_s14 = scalar_lea.vmem %s49_s18, 512  ;;  %p426_p6 = scmp.lt.s32.totalorder %s49_s18, %s49_s18 }
  0x2b   :  { %p422_p5 = scmp.ne.s32.totalorder %s49_s18, %s421_s14  ;;  %p427_p7 = scmp.lt.s32.totalorder %s421_s14, %s421_s14 }
  0x2d   :  { %p428_p8 = por %p427_p7, %p426_p6 }
  0x2f   :  { %p429_p9 = pnand %p428_p8, %p422_p5 }
  0x31   :  { %432 = shalt.err (!%p429_p9)
}
  0x32   :  { %54 = dma.hbm_to_vmem [thread:$0]  %s584_s5, 512, %s49_s18, [#allocation6], %s462_s11, %s462_s11, %s463_s12  }
  0x33   :  { %455 = dma.done.wait [#allocation3], 64  }
  0x34   :  { %456 = vsyncadd [#allocation3], 4294967232 }
  0x35   :  { %457 = dma.done.wait [#allocation6], 640  }
  0x36   :  { %458 = vsyncadd [#allocation6], 4294966656  ;;  %v466_v0 = vmov 0   ;;  %v467_v1 = vmov 0.0   ;;  %v74_v2 = vld [vmem:[%s580_s1] sm:$0xff]  ;;  %vm92_vm0 = vcmask 1044480   ;;  %v72_v5 = vlaneseq }
  0x37   :  { %359 = vset.pattern.permute.xlu0 %v466_v0  ;;  %324 = vmatprep.subr.bf16.mxu1 %v467_v1  ;;  %v360_v3 = vld [vmem:[#allocation5] sm:$0x1f]   ;;  %vm468_vm1 = vmmov 0   ;;  %vm88_vm3 = vcmask 80896   ;;  %v67_v12 = vld [vmem:[#allocation2] sm:$0xf] }
  0x38   :  { %338 = vmatprep.subr.bf16.mxu0 %v467_v1  ;;  %76 = vperm.xlu0 %359, %v74_v2   ;;  %v94_v4 = vsel %vm92_vm0, %v360_v3, 0  ;;  %v73_v6 = vand.u32 127, %v72_v5  ;;  %v361_v9 = vld [vmem:[%s581_s2] sm:$0xff]   ;;  %v362_v11 = vld [vmem:[%s581_s2 + $0x8] sm:$0xff]   ;;  %vm148_vm4 = vcmask 261120   ;;  %v364_v14 = vld [vmem:[#allocation7 + $0x8] sm:$0xff]  }
  0x39   :  { %325 = vmatpush3.bf16.msra.mxu1 %v94_v4  ;;  %326 = vmatprep.mubr.msk.bf16.mxu1 %vm468_vm1, %v467_v1  ;;  %v363_v13 = vld [vmem:[#allocation7] sm:$0xff]   ;;  %v365_v15 = vld [vmem:[#allocation7 + $0x10] sm:$0xff]   ;;  %v366_v16 = vld [vmem:[#allocation7 + $0x18] sm:$0xff]   ;;  %vm241_vm5 = vcmask 523264   ;;  %s469_s21 = smov [#allocation8]  }
  0x3a   :  { %330 = vmatprep.subr.bf16.mxu1 %v467_v1  ;;  %346 = vmatprep.mubr.msk.bf16.mxu0 %vm468_vm1, %v467_v1  ;;  %v307_v22 = vld [vmem:[%s583_s4] ss:$0 sm:$0xff]  ;;  %s292_s22 = sshll.u32 %s469_s21, 4  ;;  %s293_s22 = int_to_ptr.vmem [resolvable:$true] %s292_s22 }
  0x3b   :  { %339 = vmatpush3.bf16.msra.mxu0 %v363_v13  ;;  %v308_v30 = vld [vmem:[%s585_s6] ss:$0 sm:$0xff]  ;;  %s433_s4 = scalar_lea.vmem %s293_s22, 128  ;;  %p438_p11 = scmp.lt.s32.totalorder %s293_s22, %s293_s22 }
  0x3c   :  { %340 = vmatprep.subr.bf16.mxu0 %v467_v1  ;;  %p434_p10 = scmp.ne.s32.totalorder %s293_s22, %s433_s4  ;;  %p439_p12 = scmp.lt.s32.totalorder %s433_s4, %s433_s4 }
  0x3e   :  { %p440_p13 = por %p439_p12, %p438_p11 }
  0x3f   :  { %341 = vmatpush3.bf16.msra.mxu0 %v364_v14 }
  0x40   :  { %342 = vmatprep.subr.bf16.mxu0 %v467_v1  ;;  %p441_p0 = pnand %p440_p13, %p434_p10 }
  0x43   :  { %343 = vmatpush3.bf16.msra.mxu0 %v365_v15 }
  0x44   :  { %344 = vmatprep.subr.bf16.mxu0 %v467_v1 }
  0x47   :  { %345 = vmatpush3.bf16.msra.mxu0 %v366_v16 }
  0xb7   :  { %v77_v7 = vpop.permute.xlu0 %76 }
  0xb8   :  { %vm78_vm2 = vcmp.eq.s32.totalorder %v73_v6, %v77_v7 }
  0xb9   :  { %v79_v8 = vsel %vm78_vm2, 1.0, %v467_v1 }
  0xba   :  { %v80_v10 = vpack.c.bf16 %v79_v8, %v79_v8 }
  0xbc   :  { %327 = vmatmul.mubr.msk.bf16.vlgmr.msra.gmra.mrb[0].mxu1 %vm88_vm3, %v80_v10 }
  0xbd   :  { %331 = vmatpush3.bf16.msra.mxu1 %v361_v9  ;;  %334 = vmatprep.mubr.msk.bf16.mxu1 %vm468_vm1, %v467_v1 }
  0xbe   :  { %332 = vmatprep.subr.bf16.mxu1 %v467_v1 }
  0xc1   :  { %333 = vmatpush3.bf16.msra.mxu1 %v362_v11 }
  0xc4   :  { %335 = vmatmul.mubr.msk.bf16.vlgmr.msra.gmra.mrb[4].mxu1 %vm148_vm4, %v67_v12 }
 0x18f   :  { %v130_v17 = vpop.f32.mrb[0].mxu1 }
 0x190   :  { %v328_v18 = vpop.f32.mrb[1].mxu1 }
 0x191   :  { %v133_v19 = vpop.f32.mrb[2].mxu1 }
 0x192   :  { %v329_v20 = vpop.f32.mrb[3].mxu1 }
 0x197   :  { %v186_v21 = vpop.f32.mrb[4].mxu1 }
 0x198   :  { %v187_v23 = vadd.f32 %v186_v21, %v130_v17  ;;  %v336_v24 = vpop.f32.mrb[5].mxu1 }
 0x199   :  { %v189_v25 = vpop.f32.mrb[6].mxu1 }
 0x19a   :  { %v199_v26 = vadd.f32 %v307_v22, %v187_v23  ;;  %v337_v27 = vpop.f32.mrb[7].mxu1 }
 0x19c   :  { %v200_v28 = vmax.f32 %v199_v26, 0.0 }
 0x19e   :  { %v201_v29 = vpack.c.bf16 %v200_v28, %v200_v28 }
 0x1a0   :  { %347 = vmatmul.mubr.msk.bf16.vlgmr.msra.gmra.mrb[0].mxu0 %vm241_vm5, %v201_v29 }
 0x273   :  { %v279_v31 = vpop.f32.mrb[0].mxu0 }
 0x274   :  { %v280_v32 = vadd.f32 %v308_v30, %v279_v31  ;;  %v348_v33 = vpop.f32.mrb[1].mxu0 }
 0x275   :  { %v282_v34 = vpop.f32.mrb[2].mxu0 }
 0x276   :  { %285 = vst [vmem:[#allocation8] sm:$0xff] %v280_v32  ;;  %v349_v35 = vpop.f32.mrb[3].mxu0 }
 0x277   :  { %444 = shalt.err (!%p441_p0)
}
 0x278   :  { %s445_s6 = scalar_lea.hbm %s586_s7, 128 }
 0x279   :  { %p446_p1 = scmp.ne.s32.totalorder %s586_s7, %s445_s6  ;;  %p449_p2 = scmp.lt.u32.totalorder %s445_s6, %s586_s7 }
 0x27b   :  { %p451_p3 = pnand %p449_p2, %p446_p1 }
 0x27d   :  { %454 = shalt.err (!%p451_p3)
}
 0x27e   :  { %295 = dma.vmem_to_hbm [thread:$0]  %s293_s22, 128, %s586_s7, [#allocation4]  }
 0x27f   :  { %459 = dma.done.wait [#allocation4], 128  }
 0x280   :  { %460 = vsyncadd [#allocation4], 4294967168 }
 0x281   :  { %299 = vsyncpa [#allocation3], 1 }
 0x282   :  { %300 = vsyncpa [#allocation6], 1 }
 0x283   :  { %301 = vsyncpa [#allocation4], 1 }

</bundles_post_ra>
